<compile_context>
chip_gen: v7x
topology: tpu7x:2x2x1
jax: 0.10.0
libtpu: 0.0.40
codegen_flags: <defaults>
</compile_context>

<pallas_src>
import functools

import jax
import jax.numpy as jnp
from jax.experimental import pallas as pl
from jax.experimental.pallas import tpu as pltpu


_SUBLANE = {4: 8, 2: 16, 1: 32}   # dtype bytes -> sublane multiple
_NEG_BIG = -1e30                  # masked-logit fill; exp underflows to 0.0


def _mce_kernel(x_ref, t_ref, out_ref,
                m_sc, l_sc, st_sc, stx_sc, ign_sc, *,
                ignore_index, n_rows, n_cols):
    i = pl.program_id(0)           # row-block index   ("parallel")
    k = pl.program_id(1)           # class-chunk index ("arbitrary")
    n_k = pl.num_programs(1)

    x = x_ref[...].astype(jnp.float32)          # (tm, tc)
    t = t_ref[...].astype(jnp.float32)          # (tm, tc)
    tm, tc = x.shape

    has_ignore = ignore_index >= 0
    needs_row_mask = (n_rows % tm) != 0         # ragged / padded row block
    ragged_cols = (n_cols % tc) != 0            # ragged trailing class chunk

    @pl.when(k == 0)
    def _init():
        m_sc[...] = jnp.full_like(m_sc, _NEG_BIG)
        l_sc[...] = jnp.zeros_like(l_sc)
        st_sc[...] = jnp.zeros_like(st_sc)
        stx_sc[...] = jnp.zeros_like(stx_sc)
        ign_sc[...] = jnp.zeros_like(ign_sc)

    col_ids = None
    if has_ignore or ragged_cols:
        col_ids = k * tc + jax.lax.broadcasted_iota(jnp.int32, (tm, tc), 1)

    keep = None
    if has_ignore:
        keep = col_ids != ignore_index
    if ragged_cols:
        cv = col_ids < n_cols
        keep = cv if keep is None else jnp.logical_and(keep, cv)

    row_valid = None
    if needs_row_mask:
        row_ids = i * tm + jax.lax.broadcasted_iota(jnp.int32, (tm, 1), 0)
        row_valid = row_ids < n_rows                       # (tm, 1)
        rv = jnp.broadcast_to(row_valid, (tm, tc))
        keep = rv if keep is None else jnp.logical_and(keep, rv)

    if keep is not None:
        xm = jnp.where(keep, x, _NEG_BIG)
        tk = jnp.where(keep, t, 0.0)
    else:                                                  # dense fast path
        xm = x
        tk = t

    # Online logsumexp accumulation over class chunks.
    m_old = m_sc[...]
    m_new = jnp.maximum(m_old, jnp.max(xm, axis=-1, keepdims=True))
    alpha = jnp.exp(m_old - m_new)
    l_sc[...] = alpha * l_sc[...] + jnp.sum(jnp.exp(xm - m_new),
                                            axis=-1, keepdims=True)
    m_sc[...] = m_new
    st_sc[...] = st_sc[...] + jnp.sum(tk, axis=-1, keepdims=True)
    stx_sc[...] = stx_sc[...] + jnp.sum(tk * xm, axis=-1, keepdims=True)
    if has_ignore:
        # target[:, ignore_index]; any garbage in padded rows is neutralised
        # by the row_valid multiply in the finalize step.
        ign_sc[...] = ign_sc[...] + jnp.sum(
            jnp.where(col_ids == ignore_index, t, 0.0),
            axis=-1, keepdims=True)

    @pl.when(k == n_k - 1)
    def _finalize():
        lse = m_sc[...] + jnp.log(l_sc[...])
        row_loss = lse * st_sc[...] - stx_sc[...]          # (tm, 1)
        if has_ignore:
            rmask = jnp.where(ign_sc[...] != 1.0,
                              jnp.float32(1.0), jnp.float32(0.0))
            if needs_row_mask:
                rmask = rmask * row_valid.astype(jnp.float32)
        elif needs_row_mask:
            rmask = row_valid.astype(jnp.float32)
        else:
            rmask = jnp.ones_like(row_loss)
        part_sum = jnp.sum(row_loss * rmask)
        part_cnt = jnp.sum(rmask)
        # Lane-dense (8,128) partial block: lane 0 = loss sum, lane 1 = count.
        lane = jax.lax.broadcasted_iota(jnp.int32, (8, 128), 1)
        out_ref[...] = jnp.where(lane == 0, part_sum,
                                 jnp.where(lane == 1, part_cnt,
                                           jnp.float32(0.0)))


def multi_cross_entropy_loss(logits, target, *, size_average=True,
                             ignore_index=-500,
                             vmem_budget_bytes=16 * 1024 * 1024,
                             max_classes_per_block=None):
    """Pallas implementation of MultiCrossEntropyLoss.forward.

    logits, target: (N, C) float arrays (any float dtype). Returns scalar f32.
    """
    N, C = logits.shape
    assert target.shape == (N, C)

    b_l = jnp.dtype(logits.dtype).itemsize
    b_t = jnp.dtype(target.dtype).itemsize
    sub = max(_SUBLANE.get(b_l, 8), _SUBLANE.get(b_t, 8))

    # ---- tile sizing: streamed native-dtype double buffers + f32 temps -----
    per_elem = 2 * (b_l + b_t) + 6 * 4
    budget_elems = max(vmem_budget_bytes // per_elem, sub * 128)

    forced = (max_classes_per_block is not None) and (max_classes_per_block < C)
    if (not forced) and sub * C <= budget_elems:
        tc = C                                   # whole class dim in one chunk
    else:
        tc_cap = budget_elems // sub
        if forced:
            tc_cap = min(tc_cap, max_classes_per_block)
        tc = max(128, (tc_cap // 128) * 128)
        tc = min(tc, max(128, -(-C // 128) * 128))
    grid_cols = -(-C // tc)

    tm = min(budget_elems // tc, 1024)
    tm = max(sub, (tm // sub) * sub)
    n_ceil = -(-N // sub) * sub
    tm = min(tm, n_ceil)

    # Pad rows only when one tile exceeds the whole batch; otherwise the
    # ragged trailing row block is masked inside the kernel.
    if tm > N:
        pad = tm - N
        logits = jnp.pad(logits, ((0, pad), (0, 0)))
        target = jnp.pad(target, ((0, pad), (0, 0)))
    n_rows_arr = logits.shape[0]
    grid_rows = -(-n_rows_arr // tm)

    kernel = functools.partial(_mce_kernel, ignore_index=ignore_index,
                               n_rows=N, n_cols=C)

    cost = pl.CostEstimate(
        flops=int(6 * N * C),
        transcendentals=int(N * C),
        bytes_accessed=int(N * C * (b_l + b_t) + grid_rows * 8 * 128 * 4),
    )

    partials = pl.pallas_call(
        kernel,
        out_shape=jax.ShapeDtypeStruct((8 * grid_rows, 128), jnp.float32),
        grid_spec=pltpu.PrefetchScalarGridSpec(
            num_scalar_prefetch=0,
            grid=(grid_rows, grid_cols),
            in_specs=[
                pl.BlockSpec((tm, tc), lambda i, k: (i, k)),   # logits tile
                pl.BlockSpec((tm, tc), lambda i, k: (i, k)),   # target tile
            ],
            out_specs=pl.BlockSpec((8, 128), lambda i, k: (i, 0)),
            scratch_shapes=[pltpu.VMEM((tm, 1), jnp.float32)] * 5,
        ),
        compiler_params=pltpu.CompilerParams(
            dimension_semantics=("parallel", "arbitrary"),
            vmem_limit_bytes=32 * 1024 * 1024,
        ),
        cost_estimate=cost,
    )(logits, target)

    parts = partials.reshape(grid_rows, 8, 128)
    total = jnp.sum(parts[:, 0, 0])
    if ignore_index >= 0:
        # Matches the PyTorch reference: NaN if every row is ignored.
        return total / jnp.sum(parts[:, 0, 1])
    if size_average:
        return total / jnp.float32(N)
    return total


def _reference(logits, target, *, size_average=True, ignore_index=-500):
    # Pure-JAX reference mirroring the PyTorch forward.
    logits = logits.astype(jnp.float32)
    target = target.astype(jnp.float32)
    if ignore_index >= 0:
        C = target.shape[-1]
        notice = jnp.array([i for i in range(C) if i != ignore_index])
        lsm = jax.nn.log_softmax(logits[:, notice], axis=1)
        out = jnp.sum(-target[:, notice] * lsm, axis=1)
        keep = target[:, ignore_index] != 1
        return jnp.sum(jnp.where(keep, out, 0.0)) / jnp.sum(keep)
    lsm = jax.nn.log_softmax(logits, axis=1)
    out = jnp.sum(-target * lsm, axis=1)
    return jnp.mean(out) if size_average else jnp.sum(out)


if __name__ == "__main__":
    key = jax.random.PRNGKey(0)
    keys = jax.random.split(key, 10)

    def check(got, want, name, rtol=1e-5, atol=1e-5):
        got = jax.block_until_ready(got)
        assert jnp.allclose(got, want, rtol=rtol, atol=atol), (name, got, want)

    # Case 1: default module config (size_average=True, ignore_index=-500)
    N, C = 16, 32
    logits = jax.random.normal(keys[0], (N, C), dtype=jnp.float32)
    target = jax.nn.softmax(jax.random.normal(keys[1], (N, C)), axis=1)
    check(multi_cross_entropy_loss(logits, target),
          _reference(logits, target), "mean")

    # Case 2: sum reduction (size_average=False, no ignore)
    check(multi_cross_entropy_loss(logits, target, size_average=False),
          _reference(logits, target, size_average=False), "sum")

    # Case 3: ignore_index + ragged (non-multiple-of-8) batch
    N2, C2, ign = 20, 32, 3
    logits2 = jax.random.normal(keys[2], (N2, C2), dtype=jnp.float32)
    target2 = jax.nn.softmax(jax.random.normal(keys[3], (N2, C2)), axis=1)
    one_hot_ign = jnp.zeros((C2,), jnp.float32).at[ign].set(1.0)
    target2 = target2.at[jnp.array([0, 5, 7, 13])].set(one_hot_ign)
    check(multi_cross_entropy_loss(logits2, target2, ignore_index=ign),
          _reference(logits2, target2, ignore_index=ign), "ignore+ragged")

    # Case 4: ragged batch, no ignore
    check(multi_cross_entropy_loss(logits2, target2),
          _reference(logits2, target2), "ragged mean")

    # Case 5: multi class-chunk path (forced), ignore column in 2nd chunk
    N3, C3, ign3 = 20, 256, 200
    logits3 = jax.random.normal(keys[4], (N3, C3), dtype=jnp.float32)
    target3 = jax.nn.softmax(jax.random.normal(keys[5], (N3, C3)), axis=1)
    oh3 = jnp.zeros((C3,), jnp.float32).at[ign3].set(1.0)
    target3 = target3.at[jnp.array([1, 9])].set(oh3)
    check(multi_cross_entropy_loss(logits3, target3, ignore_index=ign3,
                                   max_classes_per_block=128),
          _reference(logits3, target3, ignore_index=ign3), "chunked ignore")

    # Case 6: ragged class chunks (C not a multiple of the chunk size)
    N4, C4 = 24, 320
    logits4 = jax.random.normal(keys[6], (N4, C4), dtype=jnp.float32)
    target4 = jax.nn.softmax(jax.random.normal(keys[7], (N4, C4)), axis=1)
    check(multi_cross_entropy_loss(logits4, target4,
                                   max_classes_per_block=128),
          _reference(logits4, target4), "ragged chunks mean")
    check(multi_cross_entropy_loss(logits4, target4, ignore_index=7,
                                   max_classes_per_block=128),
          _reference(logits4, target4, ignore_index=7), "ragged chunks ignore")

    # Case 7: bf16 inputs streamed in native dtype
    check(multi_cross_entropy_loss(logits.astype(jnp.bfloat16),
                                   target.astype(jnp.bfloat16)),
          _reference(logits.astype(jnp.bfloat16),
                     target.astype(jnp.bfloat16)), "bf16")

    # Case 8: multiple row blocks x multiple class chunks + ragged rows
    N5, C5, ign5 = 36, 256, 100
    logits5 = jax.random.normal(keys[8], (N5, C5), dtype=jnp.float32)
    target5 = jax.nn.softmax(jax.random.normal(keys[9], (N5, C5)), axis=1)
    oh5 = jnp.zeros((C5,), jnp.float32).at[ign5].set(1.0)
    target5 = target5.at[jnp.array([2, 30])].set(oh5)
    check(multi_cross_entropy_loss(logits5, target5, ignore_index=ign5,
                                   max_classes_per_block=128,
                                   vmem_budget_bytes=160_000),
          _reference(logits5, target5, ignore_index=ign5), "2d grid ignore")
    check(multi_cross_entropy_loss(logits5, target5, size_average=False,
                                   max_classes_per_block=128,
                                   vmem_budget_bytes=160_000),
          _reference(logits5, target5, size_average=False), "2d grid sum")

    print("KERNEL_OK")
</pallas_src>

<mosaic_0001>
module attributes {stable_mosaic.version = 11 : i64} {
  func.func @_mce_kernel(%arg0: i32, %arg1: i32, %arg2: memref<16x32xf32, #tpu.memory_space<vmem>>, %arg3: memref<16x32xf32, #tpu.memory_space<vmem>>, %arg4: memref<8x128xf32, #tpu.memory_space<vmem>>, %arg5: memref<16x1xf32, #tpu.memory_space<vmem>>, %arg6: memref<16x1xf32, #tpu.memory_space<vmem>>, %arg7: memref<16x1xf32, #tpu.memory_space<vmem>>, %arg8: memref<16x1xf32, #tpu.memory_space<vmem>>, %arg9: memref<16x1xf32, #tpu.memory_space<vmem>>) attributes {dimension_semantics = [#tpu.dimension_semantics<parallel>, #tpu.dimension_semantics<arbitrary>], iteration_bounds = array<i64: 1, 1>, scalar_prefetch = 0 : i64, scratch_operands = 5 : i64, tpu.core_type = #tpu.core_type<tc>, window_params = [{transform_indices = @transform_0, window_bounds = array<i64: 16, 32>}, {transform_indices = @transform_1, window_bounds = array<i64: 16, 32>}, {transform_indices = @transform_2, window_bounds = array<i64: 8, 128>}]} {
    %c0 = arith.constant 0 : index
    %c0_0 = arith.constant 0 : index
    %0 = vector.load %arg2[%c0, %c0_0] : memref<16x32xf32, #tpu.memory_space<vmem>>, vector<16x32xf32>
    %c0_1 = arith.constant 0 : index
    %c0_2 = arith.constant 0 : index
    %1 = vector.load %arg3[%c0_1, %c0_2] : memref<16x32xf32, #tpu.memory_space<vmem>>, vector<16x32xf32>
    %c0_i32 = arith.constant 0 : i32
    %2 = arith.cmpi eq, %arg1, %c0_i32 : i32
    %3 = arith.extui %2 : i1 to i32
    %c0_i32_3 = arith.constant 0 : i32
    %4 = arith.cmpi ne, %3, %c0_i32_3 : i32
    scf.if %4 {
      %cst_25 = arith.constant -1.000000e+30 : f32
      %35 = vector.broadcast %cst_25 : f32 to vector<16x1xf32>
      %c0_26 = arith.constant 0 : index
      %c0_27 = arith.constant 0 : index
      %36 = vector.load %arg5[%c0_26, %c0_27] : memref<16x1xf32, #tpu.memory_space<vmem>>, vector<16x1xf32>
      tpu.vector_store %arg5[%c0_26, %c0_27], %35 {strides = array<i32>} : memref<16x1xf32, #tpu.memory_space<vmem>>, vector<16x1xf32>,
      %cst_28 = arith.constant 0.000000e+00 : f32
      %37 = vector.broadcast %cst_28 : f32 to vector<16x1xf32>
      %c0_29 = arith.constant 0 : index
      %c0_30 = arith.constant 0 : index
      %38 = vector.load %arg6[%c0_29, %c0_30] : memref<16x1xf32, #tpu.memory_space<vmem>>, vector<16x1xf32>
      tpu.vector_store %arg6[%c0_29, %c0_30], %37 {strides = array<i32>} : memref<16x1xf32, #tpu.memory_space<vmem>>, vector<16x1xf32>,
      %cst_31 = arith.constant 0.000000e+00 : f32
      %39 = vector.broadcast %cst_31 : f32 to vector<16x1xf32>
      %c0_32 = arith.constant 0 : index
      %c0_33 = arith.constant 0 : index
      %40 = vector.load %arg7[%c0_32, %c0_33] : memref<16x1xf32, #tpu.memory_space<vmem>>, vector<16x1xf32>
      tpu.vector_store %arg7[%c0_32, %c0_33], %39 {strides = array<i32>} : memref<16x1xf32, #tpu.memory_space<vmem>>, vector<16x1xf32>,
      %cst_34 = arith.constant 0.000000e+00 : f32
      %41 = vector.broadcast %cst_34 : f32 to vector<16x1xf32>
      %c0_35 = arith.constant 0 : index
      %c0_36 = arith.constant 0 : index
      %42 = vector.load %arg8[%c0_35, %c0_36] : memref<16x1xf32, #tpu.memory_space<vmem>>, vector<16x1xf32>
      tpu.vector_store %arg8[%c0_35, %c0_36], %41 {strides = array<i32>} : memref<16x1xf32, #tpu.memory_space<vmem>>, vector<16x1xf32>,
      %cst_37 = arith.constant 0.000000e+00 : f32
      %43 = vector.broadcast %cst_37 : f32 to vector<16x1xf32>
      %c0_38 = arith.constant 0 : index
      %c0_39 = arith.constant 0 : index
      %44 = vector.load %arg9[%c0_38, %c0_39] : memref<16x1xf32, #tpu.memory_space<vmem>>, vector<16x1xf32>
      tpu.vector_store %arg9[%c0_38, %c0_39], %43 {strides = array<i32>} : memref<16x1xf32, #tpu.memory_space<vmem>>, vector<16x1xf32>,
    } else {
    }
    %c0_4 = arith.constant 0 : index
    %c0_5 = arith.constant 0 : index
    %5 = vector.load %arg5[%c0_4, %c0_5] : memref<16x1xf32, #tpu.memory_space<vmem>>, vector<16x1xf32>
    %cst = arith.constant dense<0xFF800000> : vector<16xf32>
    %6 = vector.multi_reduction <maximumf>, %0, %cst [1] : vector<16x32xf32> to vector<16xf32>
    %7 = vector.shape_cast %6 : vector<16xf32> to vector<16x1xf32>
    %8 = arith.maximumf %5, %7 : vector<16x1xf32>
    %9 = arith.subf %5, %8 : vector<16x1xf32>
    %10 = math.exp %9 : vector<16x1xf32>
    %c0_6 = arith.constant 0 : index
    %c0_7 = arith.constant 0 : index
    %11 = vector.load %arg6[%c0_6, %c0_7] : memref<16x1xf32, #tpu.memory_space<vmem>>, vector<16x1xf32>
    %12 = arith.mulf %10, %11 : vector<16x1xf32>
    %13 = vector.broadcast %8 : vector<16x1xf32> to vector<16x32xf32>
    %14 = arith.subf %0, %13 : vector<16x32xf32>
    %15 = math.exp %14 : vector<16x32xf32>
    %cst_8 = arith.constant dense<0.000000e+00> : vector<16xf32>
    %16 = vector.multi_reduction <add>, %15, %cst_8 [1] : vector<16x32xf32> to vector<16xf32>
    %17 = vector.shape_cast %16 : vector<16xf32> to vector<16x1xf32>
    %18 = arith.addf %12, %17 : vector<16x1xf32>
    %c0_9 = arith.constant 0 : index
    %c0_10 = arith.constant 0 : index
    %19 = vector.load %arg6[%c0_9, %c0_10] : memref<16x1xf32, #tpu.memory_space<vmem>>, vector<16x1xf32>
    tpu.vector_store %arg6[%c0_9, %c0_10], %18 {strides = array<i32>} : memref<16x1xf32, #tpu.memory_space<vmem>>, vector<16x1xf32>,
    %c0_11 = arith.constant 0 : index
    %c0_12 = arith.constant 0 : index
    %20 = vector.load %arg5[%c0_11, %c0_12] : memref<16x1xf32, #tpu.memory_space<vmem>>, vector<16x1xf32>
    tpu.vector_store %arg5[%c0_11, %c0_12], %8 {strides = array<i32>} : memref<16x1xf32, #tpu.memory_space<vmem>>, vector<16x1xf32>,
    %c0_13 = arith.constant 0 : index
    %c0_14 = arith.constant 0 : index
    %21 = vector.load %arg7[%c0_13, %c0_14] : memref<16x1xf32, #tpu.memory_space<vmem>>, vector<16x1xf32>
    %cst_15 = arith.constant dense<0.000000e+00> : vector<16xf32>
    %22 = vector.multi_reduction <add>, %1, %cst_15 [1] : vector<16x32xf32> to vector<16xf32>
    %23 = vector.shape_cast %22 : vector<16xf32> to vector<16x1xf32>
    %24 = arith.addf %21, %23 : vector<16x1xf32>
    %c0_16 = arith.constant 0 : index
    %c0_17 = arith.constant 0 : index
    %25 = vector.load %arg7[%c0_16, %c0_17] : memref<16x1xf32, #tpu.memory_space<vmem>>, vector<16x1xf32>
    tpu.vector_store %arg7[%c0_16, %c0_17], %24 {strides = array<i32>} : memref<16x1xf32, #tpu.memory_space<vmem>>, vector<16x1xf32>,
    %c0_18 = arith.constant 0 : index
    %c0_19 = arith.constant 0 : index
    %26 = vector.load %arg8[%c0_18, %c0_19] : memref<16x1xf32, #tpu.memory_space<vmem>>, vector<16x1xf32>
    %27 = arith.mulf %1, %0 : vector<16x32xf32>
    %cst_20 = arith.constant dense<0.000000e+00> : vector<16xf32>
    %28 = vector.multi_reduction <add>, %27, %cst_20 [1] : vector<16x32xf32> to vector<16xf32>
    %29 = vector.shape_cast %28 : vector<16xf32> to vector<16x1xf32>
    %30 = arith.addf %26, %29 : vector<16x1xf32>
    %c0_21 = arith.constant 0 : index
    %c0_22 = arith.constant 0 : index
    %31 = vector.load %arg8[%c0_21, %c0_22] : memref<16x1xf32, #tpu.memory_space<vmem>>, vector<16x1xf32>
    tpu.vector_store %arg8[%c0_21, %c0_22], %30 {strides = array<i32>} : memref<16x1xf32, #tpu.memory_space<vmem>>, vector<16x1xf32>,
    %c0_i32_23 = arith.constant 0 : i32
    %32 = arith.cmpi eq, %arg1, %c0_i32_23 : i32
    %33 = arith.extui %32 : i1 to i32
    %c0_i32_24 = arith.constant 0 : i32
    %34 = arith.cmpi ne, %33, %c0_i32_24 : i32
    scf.if %34 {
      %c0_25 = arith.constant 0 : index
      %c0_26 = arith.constant 0 : index
      %35 = vector.load %arg5[%c0_25, %c0_26] : memref<16x1xf32, #tpu.memory_space<vmem>>, vector<16x1xf32>
      %c0_27 = arith.constant 0 : index
      %c0_28 = arith.constant 0 : index
      %36 = vector.load %arg6[%c0_27, %c0_28] : memref<16x1xf32, #tpu.memory_space<vmem>>, vector<16x1xf32>
      %37 = math.log %36 : vector<16x1xf32>
      %38 = arith.addf %35, %37 : vector<16x1xf32>
      %c0_29 = arith.constant 0 : index
      %c0_30 = arith.constant 0 : index
      %39 = vector.load %arg7[%c0_29, %c0_30] : memref<16x1xf32, #tpu.memory_space<vmem>>, vector<16x1xf32>
      %40 = arith.mulf %38, %39 : vector<16x1xf32>
      %c0_31 = arith.constant 0 : index
      %c0_32 = arith.constant 0 : index
      %41 = vector.load %arg8[%c0_31, %c0_32] : memref<16x1xf32, #tpu.memory_space<vmem>>, vector<16x1xf32>
      %42 = arith.subf %40, %41 : vector<16x1xf32>
      %cst_33 = arith.constant 1.000000e+00 : f32
      %43 = vector.broadcast %cst_33 : f32 to vector<16x1xf32>
      %44 = arith.mulf %42, %43 : vector<16x1xf32>
      %45 = vector.shape_cast %44 : vector<16x1xf32> to vector<1x16x1xf32>
      %cst_34 = arith.constant dense<0.000000e+00> : vector<1xf32>
      %46 = vector.multi_reduction <add>, %45, %cst_34 [1, 2] : vector<1x16x1xf32> to vector<1xf32>
      %47 = vector.shape_cast %46 : vector<1xf32> to vector<1x1x1xf32>
      %48 = vector.extract %47[0, 0, 0] : f32 from vector<1x1x1xf32>
      %49 = vector.shape_cast %43 : vector<16x1xf32> to vector<1x16x1xf32>
      %cst_35 = arith.constant dense<0.000000e+00> : vector<1xf32>
      %50 = vector.multi_reduction <add>, %49, %cst_35 [1, 2] : vector<1x16x1xf32> to vector<1xf32>
      %51 = vector.shape_cast %50 : vector<1xf32> to vector<1x1x1xf32>
      %52 = vector.extract %51[0, 0, 0] : f32 from vector<1x1x1xf32>
      %53 = tpu.iota {dimensions = array<i32: 1>} : vector<8x128xi32>
      %c0_i32_36 = arith.constant 0 : i32
      %54 = vector.broadcast %c0_i32_36 : i32 to vector<8x128xi32>
      %55 = arith.cmpi eq, %53, %54 : vector<8x128xi32>
      %c1_i32 = arith.constant 1 : i32
      %56 = vector.broadcast %c1_i32 : i32 to vector<8x128xi32>
      %57 = arith.cmpi eq, %53, %56 : vector<8x128xi32>
      %cst_37 = arith.constant 0.000000e+00 : f32
      %58 = vector.broadcast %52 : f32 to vector<8x128xf32>
      %59 = vector.broadcast %cst_37 : f32 to vector<8x128xf32>
      %60 = arith.select %57, %58, %59 : vector<8x128xi1>, vector<8x128xf32>
      %61 = vector.broadcast %48 : f32 to vector<8x128xf32>
      %62 = arith.select %55, %61, %60 : vector<8x128xi1>, vector<8x128xf32>
      %c0_38 = arith.constant 0 : index
      %c0_39 = arith.constant 0 : index
      %63 = vector.load %arg4[%c0_38, %c0_39] : memref<8x128xf32, #tpu.memory_space<vmem>>, vector<8x128xf32>
      tpu.vector_store %arg4[%c0_38, %c0_39], %62 {strides = array<i32>} : memref<8x128xf32, #tpu.memory_space<vmem>>, vector<8x128xf32>,
    } else {
    }
    return
  }
  func.func @transform_0(%arg0: i32, %arg1: i32) -> (i32, i32) {
    %c0_i32 = arith.constant 0 : i32
    return %arg0, %arg1 : i32, i32
  }
  func.func @transform_1(%arg0: i32, %arg1: i32) -> (i32, i32) {
    %c0_i32 = arith.constant 0 : i32
    return %arg0, %arg1 : i32, i32
  }
  func.func @transform_2(%arg0: i32, %arg1: i32) -> (i32, i32) {
    %c0_i32 = arith.constant 0 : i32
    %c0_i32_0 = arith.constant 0 : i32
    return %arg0, %c0_i32 : i32, i32
  }
}

</mosaic_0001>

<bundles_post_ra>
// kernel: tpu_custom_call.1
= control target key start
LH: loop header
LB: loop body
LE: loop exit
PB: predicated region body
PF: predicated region fallthrough
CT: control target
= control target key end

     0   :  { %7 = vsyncpa [#allocation8], 0  ;;  %s395_s0 = inlined_call_operand.hbm [shape: f32[16,32], index: 0, kind: input, shape index: {}]   ;;  %s396_s1 = inlined_call_operand.hbm [shape: f32[16,32], index: 1, kind: input, shape index: {}]   ;;  %s397_s2 = inlined_call_operand.hbm [shape: f32[8,128], index: 2, kind: output, shape index: {}]  }
   0x1   :  { %8 = vsyncpa [#allocation11], 0 }
   0x2   :  { %9 = vsyncpa [#allocation9], 0  ;;  %s302_s9 = smov [#allocation7]   ;;  %s230_s13 = scalar_lea.hbm %s395_s0, 256 }
   0x3   :  { %s15_s10 = sshll.u32 %s302_s9, 4  ;;  %p231_p0 = scmp.ne.s32.totalorder %s395_s0, %s230_s13  ;;  %s16_s10 = int_to_ptr.vmem [resolvable:$true] %s15_s10 }
   0x4   :  { %p234_p1 = scmp.lt.u32.totalorder %s230_s13, %s395_s0 }
   0x6   :  { %p236_p2 = pnand %p234_p1, %p231_p0 }
   0x8   :  { %239 = shalt.err (!%p236_p2)
}
   0x9   :  { %s240_s18 = scalar_lea.vmem %s16_s10, 256  ;;  %p245_p4 = scmp.lt.s32.totalorder %s16_s10, %s16_s10 }
   0xa   :  { %p241_p3 = scmp.ne.s32.totalorder %s16_s10, %s240_s18  ;;  %p246_p5 = scmp.lt.s32.totalorder %s240_s18, %s240_s18 }
   0xc   :  { %p247_p6 = por %p246_p5, %p245_p4 }
   0xe   :  { %p248_p7 = pnand %p247_p6, %p241_p3 }
  0x10   :  { %251 = shalt.err (!%p248_p7)
}
  0x11   :  { %s303_s19 = smov 128   ;;  %s304_s20 = smov 8  }
  0x12   :  { %21 = dma.hbm_to_vmem [thread:$0]  %s395_s0, 256, %s16_s10, [#allocation8], %s303_s19, %s303_s19, %s304_s20  }
  0x13   :  { %s305_s23 = smov [#allocation10]   ;;  %s252_s27 = scalar_lea.hbm %s396_s1, 256 }
  0x14   :  { %s27_s24 = sshll.u32 %s305_s23, 4  ;;  %p253_p8 = scmp.ne.s32.totalorder %s396_s1, %s252_s27  ;;  %s28_s24 = int_to_ptr.vmem [resolvable:$true] %s27_s24 }
  0x15   :  { %p256_p9 = scmp.lt.u32.totalorder %s252_s27, %s396_s1 }
  0x17   :  { %p258_p10 = pnand %p256_p9, %p253_p8 }
  0x19   :  { %261 = shalt.err (!%p258_p10)
}
  0x1a   :  { %s262_s4 = scalar_lea.vmem %s28_s24, 256  ;;  %p267_p12 = scmp.lt.s32.totalorder %s28_s24, %s28_s24 }
  0x1b   :  { %p263_p11 = scmp.ne.s32.totalorder %s28_s24, %s262_s4  ;;  %p268_p13 = scmp.lt.s32.totalorder %s262_s4, %s262_s4 }
  0x1d   :  { %p269_p0 = por %p268_p13, %p267_p12 }
  0x1f   :  { %p270_p1 = pnand %p269_p0, %p263_p11 }
  0x21   :  { %273 = shalt.err (!%p270_p1)
}
  0x22   :  { %33 = dma.hbm_to_vmem [thread:$0]  %s396_s1, 256, %s28_s24, [#allocation11], %s303_s19, %s303_s19, %s304_s20  }
  0x23   :  { %296 = dma.done.wait [#allocation8], 256  }
  0x24   :  { %297 = vsyncadd [#allocation8], 4294967040 }
  0x25   :  { %298 = dma.done.wait [#allocation11], 256  }
  0x26   :  { %299 = vsyncadd [#allocation11], 4294967040  ;;  %vm48_vm0 = vcmask 7168   ;;  %v306_v0 = vmov -1e+30   ;;  %vm61_vm1 = vcmask 261120  }
  0x27   :  { %49 = vst.msk [vmem:[#allocation2] sm:$0xff] %vm48_vm0, %v306_v0  ;;  %50 = vst.msk [vmem:[#allocation2 + $0x8] sm:$0xff] %vm48_vm0, %v306_v0  ;;  %v40_v1 = vld [vmem:[#allocation7] sm:$0xff]  ;;  %v41_v2 = vld [vmem:[#allocation7 + $0x8] sm:$0xff]  ;;  %v307_v5 = vmov 0   ;;  %v308_v6 = vmov 0.0  }
  0x28   :  { %v62_v3 = vsel %vm61_vm1, %v40_v1, -inf  ;;  %v65_v4 = vsel %vm61_vm1, %v41_v2, -inf  ;;  %216 = vset.pattern.permute.xlu1 %v307_v5  ;;  %217 = vset.pattern.permute.xlu0 %v307_v5  ;;  %51 = vst.msk [vmem:[#allocation3] sm:$0xff] %vm48_vm0, %v308_v6  ;;  %52 = vst.msk [vmem:[#allocation3 + $0x8] sm:$0xff] %vm48_vm0, %v308_v6  ;;  %v42_v22 = vld [vmem:[#allocation10] sm:$0xff]  ;;  %v43_v26 = vld [vmem:[#allocation10 + $0x8] sm:$0xff] }
  0x29   :  { %63 = vmax.xlane.f32.xlu0 %v62_v3  ;;  %53 = vst.msk [vmem:[#allocation4] sm:$0xff] %vm48_vm0, %v308_v6  ;;  %54 = vst.msk [vmem:[#allocation4 + $0x8] sm:$0xff] %vm48_vm0, %v308_v6  ;;  %v111_v24 = vsel %vm61_vm1, %v42_v22, 0.0  ;;  %v114_v28 = vsel %vm61_vm1, %v43_v26, 0.0  ;;  %v123_v29 = vmul.f32 %v42_v22, %v40_v1  ;;  %v124_v31 = vmul.f32 %v43_v26, %v41_v2  ;;  %s309_s6 = smov [#allocation12]  }
  0x2a   :  { %55 = vst.msk [vmem:[#allocation5] sm:$0xff] %vm48_vm0, %v308_v6  ;;  %56 = vst.msk [vmem:[#allocation5 + $0x8] sm:$0xff] %vm48_vm0, %v308_v6  ;;  %s194_s7 = sshll.u32 %s309_s6, 4  ;;  %s195_s7 = int_to_ptr.vmem [resolvable:$true] %s194_s7 }
  0x2b   :  { %v125_v30 = vsel %vm61_vm1, %v123_v29, 0.0  ;;  %v128_v32 = vsel %vm61_vm1, %v124_v31, 0.0  ;;  %s274_s9 = scalar_lea.vmem %s195_s7, 128  ;;  %p279_p3 = scmp.lt.s32.totalorder %s195_s7, %s195_s7 }
  0x2c   :  { %p275_p2 = scmp.ne.s32.totalorder %s195_s7, %s274_s9  ;;  %p280_p4 = scmp.lt.s32.totalorder %s274_s9, %s274_s9 }
  0x2d   :  { %66 = vmax.xlane.f32.xlu0 %v65_v4 }
  0x2e   :  { %v59_v7 = vld [vmem:[#allocation2] sm:$0xff]  ;;  %v60_v10 = vld [vmem:[#allocation2 + $0x8] sm:$0xff]  ;;  %p281_p5 = por %p280_p4, %p279_p3 }
  0x2f   :  { %v76_v36 = vld [vmem:[#allocation3] sm:$0xff]  ;;  %v77_v40 = vld [vmem:[#allocation3 + $0x8] sm:$0xff] }
  0x30   :  { %v109_v42 = vld [vmem:[#allocation4] sm:$0xff]  ;;  %v110_v48 = vld [vmem:[#allocation4 + $0x8] sm:$0xff]  ;;  %p282_p6 = pnand %p281_p5, %p275_p2 }
  0x31   :  { %v121_v51 = vld [vmem:[#allocation5] sm:$0xff]  ;;  %v122_v55 = vld [vmem:[#allocation5 + $0x8] sm:$0xff] }
  0xb6   :  { %v64_v8 = vpop.xlane.xlu0 %63 }
  0xb7   :  { %v68_v9 = vmax.f32 %v59_v7, %v64_v8 }
  0xb9   :  { %v70_v11 = vsub.f32 %v59_v7, %v68_v9  ;;  %107 = vst.msk [vmem:[#allocation2] sm:$0xff] %vm48_vm0, %v68_v9  ;;  %82 = vperm.xlu1 %216, %v68_v9  }
  0xba   :  { %v67_v12 = vpop.xlane.xlu0 %66 }
  0xbb   :  { %v69_v13 = vmax.f32 %v60_v10, %v67_v12  ;;  %v72_v33 = vmul.f32 1.442695, %v70_v11 }
  0xbd   :  { %v71_v14 = vsub.f32 %v60_v10, %v69_v13  ;;  %108 = vst.msk [vmem:[#allocation2 + $0x8] sm:$0xff] %vm48_vm0, %v69_v13  ;;  %87 = vperm.xlu1 %216, %v69_v13  }
  0xbf   :  { %v74_v34 = vmul.f32 1.442695, %v71_v14  ;;  %v168_v14 = vsel %vm48_vm0, 1.0, %v308_v6  ;;  %v179_v6 = vlaneseq }
  0xc0   :  { %v138_v61 = vld [vmem:[#allocation2] sm:$0xff] }
  0xc1   :  { %v180_v31 = vand.u32 127, %v179_v6 }
  0xc3   :  { %vm182_vm2 = vcmp.eq.s32.totalorder %v180_v31, 1  ;;  %vm181_vm3 = vcmp.eq.s32.totalorder %v180_v31, 0 }
  0xc4   :  { %v139_v3 = vld [vmem:[#allocation2 + $0x8] sm:$0xff] }
 0x138   :  { %v83_v15 = vpop.permute.xlu1 %82 }
 0x139   :  { %v90_v16 = vsub.f32 %v40_v1, %v83_v15 }
 0x13b   :  { %v92_v17 = vmul.f32 1.442695, %v90_v16  ;;  %v169_v16 = vadd.f32 %v168_v14, %v168_v14 }
 0x13c   :  { %v88_v18 = vpop.permute.xlu1 %87 }
 0x13d   :  { %218 = vpow2.f32 %v92_v17  ;;  %v91_v19 = vsub.f32 %v41_v2, %v88_v18 }
 0x13f   :  { %v94_v20 = vmul.f32 1.442695, %v91_v19 }
 0x141   :  { %220 = vpow2.f32 %v94_v20 }
 0x142   :  { %222 = vpow2.f32 %v72_v33 }
 0x143   :  { %224 = vpow2.f32 %v74_v34 }
 0x147   :  { %v219_v21 = vpop.eup %218 }
 0x148   :  { %v96_v23 = vsel %vm61_vm1, %v219_v21, 0.0 }
 0x149   :  { %97 = vadd.xlane.f32.xlu0 %v96_v23 }
 0x14b   :  { %v221_v25 = vpop.eup %220 }
 0x14c   :  { %v99_v27 = vsel %vm61_vm1, %v221_v25, 0.0  ;;  %v223_v35 = vpop.eup %222 }
 0x14d   :  { %100 = vadd.xlane.f32.xlu1 %v99_v27  ;;  %112 = vadd.xlane.f32.xlu0 %v111_v24  ;;  %v78_v37 = vmul.f32 %v223_v35, %v76_v36  ;;  %v225_v38 = vpop.eup %224 }
 0x14e   :  { %v79_v43 = vmul.f32 %v225_v38, %v77_v40 }
 0x151   :  { %115 = vadd.xlane.f32.xlu0 %v114_v28 }
 0x155   :  { %126 = vadd.xlane.f32.xlu0 %v125_v30 }
 0x159   :  { %129 = vadd.xlane.f32.xlu0 %v128_v32 }
 0x1d6   :  { %v98_v39 = vpop.xlane.xlu0 %97 }
 0x1d7   :  { %v102_v41 = vadd.f32 %v98_v39, %v78_v37 }
 0x1d9   :  { %105 = vst.msk [vmem:[#allocation3] sm:$0xff] %vm48_vm0, %v102_v41 }
 0x1da   :  { %v101_v44 = vpop.xlane.xlu1 %100  ;;  %v113_v45 = vpop.xlane.xlu0 %112 }
 0x1db   :  { %v103_v46 = vadd.f32 %v101_v44, %v79_v43  ;;  %v117_v47 = vadd.f32 %v113_v45, %v109_v42 }
 0x1dd   :  { %106 = vst.msk [vmem:[#allocation3 + $0x8] sm:$0xff] %vm48_vm0, %v103_v46  ;;  %119 = vst.msk [vmem:[#allocation4] sm:$0xff] %vm48_vm0, %v117_v47 }
 0x1de   :  { %v116_v49 = vpop.xlane.xlu0 %115 }
 0x1df   :  { %v118_v50 = vadd.f32 %v116_v49, %v110_v48 }
 0x1e0   :  { %v140_v52 = vld [vmem:[#allocation3] sm:$0xff] }
 0x1e1   :  { %120 = vst.msk [vmem:[#allocation4 + $0x8] sm:$0xff] %vm48_vm0, %v118_v50  ;;  %226 = vlog2.f32 %v140_v52 }
 0x1e2   :  { %v127_v53 = vpop.xlane.xlu0 %126 }
 0x1e3   :  { %v131_v54 = vadd.f32 %v127_v53, %v121_v51 }
 0x1e4   :  { %v141_v56 = vld [vmem:[#allocation3 + $0x8] sm:$0xff]  ;;  %v148_v0 = vld [vmem:[#allocation4] sm:$0xff] }
 0x1e5   :  { %133 = vst.msk [vmem:[#allocation5] sm:$0xff] %vm48_vm0, %v131_v54  ;;  %228 = vlog2.f32 %v141_v56 }
 0x1e6   :  { %v130_v57 = vpop.xlane.xlu0 %129 }
 0x1e7   :  { %v132_v58 = vadd.f32 %v130_v57, %v122_v55 }
 0x1e8   :  { %v149_v7 = vld [vmem:[#allocation4 + $0x8] sm:$0xff] }
 0x1e9   :  { %134 = vst.msk [vmem:[#allocation5 + $0x8] sm:$0xff] %vm48_vm0, %v132_v58 }
 0x1eb   :  { %v227_v59 = vpop.eup %226 }
 0x1ec   :  { %v143_v60 = vmul.f32 0.6931472, %v227_v59  ;;  %v152_v4 = vld [vmem:[#allocation5] sm:$0xff] }
 0x1ee   :  { %v146_v62 = vadd.f32 %v143_v60, %v138_v61 }
 0x1ef   :  { %v229_v63 = vpop.eup %228 }
 0x1f0   :  { %v145_v1 = vmul.f32 0.6931472, %v229_v63  ;;  %v150_v2 = vmul.f32 %v148_v0, %v146_v62  ;;  %v153_v8 = vld [vmem:[#allocation5 + $0x8] sm:$0xff] }
 0x1f2   :  { %v147_v5 = vadd.f32 %v145_v1, %v139_v3  ;;  %v154_v10 = vsub.f32 %v150_v2, %v152_v4 }
 0x1f4   :  { %v151_v9 = vmul.f32 %v149_v7, %v147_v5  ;;  %v156_v12 = vsel %vm48_vm0, %v154_v10, 0.0 }
 0x1f6   :  { %v155_v11 = vsub.f32 %v151_v9, %v153_v8 }
 0x1f8   :  { %v157_v13 = vsel %vm48_vm0, %v155_v11, 0.0 }
 0x1f9   :  { %v158_v15 = vadd.f32 %v157_v13, %v156_v12 }
 0x1fb   :  { %159 = vadd.xlane.f32.xlu0 %v158_v15 }
 0x1ff   :  { %170 = vadd.xlane.f32.xlu0 %v169_v16 }
 0x288   :  { %v160_v17 = vpop.xlane.xlu0 %159 }
 0x289   :  { %v161_v18 = vrot.slane %v160_v17, 4 }
 0x28b   :  { %v162_v19 = vadd.f32 %v161_v18, %v160_v17 }
 0x28c   :  { %v171_v20 = vpop.xlane.xlu0 %170 }
 0x28d   :  { %v163_v21 = vrot.slane %v162_v19, 2  ;;  %v172_v22 = vrot.slane %v171_v20, 4 }
 0x28f   :  { %v173_v23 = vadd.f32 %v172_v22, %v171_v20  ;;  %v164_v24 = vadd.f32 %v163_v21, %v162_v19 }
 0x291   :  { %v174_v25 = vrot.slane %v173_v23, 2  ;;  %v165_v26 = vrot.slane %v164_v24, 1 }
 0x293   :  { %v175_v27 = vadd.f32 %v174_v25, %v173_v23  ;;  %v166_v28 = vadd.f32 %v165_v26, %v164_v24 }
 0x295   :  { %204 = vpush %v166_v28  ;;  %v176_v29 = vrot.slane %v175_v27, 1 }
 0x297   :  { %v177_v30 = vadd.f32 %v176_v29, %v175_v27 }
 0x299   :  { %206 = vpush %v177_v30 }
 0x2c6   :  { %s205_s1 = spop %204 }
 0x2c7   :  { %v185_v33 = vstv %s205_s1 }
 0x2ca   :  { %s207_s8 = spop %206 }
 0x2cb   :  { %v183_v32 = vstv %s207_s8 }
 0x2cc   :  { %v184_v34 = vsel %vm182_vm2, %v183_v32, 0.0 }
 0x2cd   :  { %v186_v35 = vsel %vm181_vm3, %v185_v33, %v184_v34 }
 0x2ce   :  { %187 = vst [vmem:[#allocation12] sm:$0xff] %v186_v35 }
 0x2cf   :  { %285 = shalt.err (!%p282_p6)
}
 0x2d0   :  { %s286_s12 = scalar_lea.hbm %s397_s2, 128 }
 0x2d1   :  { %p287_p7 = scmp.ne.s32.totalorder %s397_s2, %s286_s12  ;;  %p290_p8 = scmp.lt.u32.totalorder %s286_s12, %s397_s2 }
 0x2d3   :  { %p292_p9 = pnand %p290_p8, %p287_p7 }
 0x2d5   :  { %295 = shalt.err (!%p292_p9)
}
 0x2d6   :  { %197 = dma.vmem_to_hbm [thread:$0]  %s195_s7, 128, %s397_s2, [#allocation9]  }
 0x2d7   :  { %300 = dma.done.wait [#allocation9], 128  }
 0x2d8   :  { %301 = vsyncadd [#allocation9], 4294967168 }
 0x2d9   :  { %201 = vsyncpa [#allocation8], 1 }
 0x2da   :  { %202 = vsyncpa [#allocation11], 1 }
 0x2db   :  { %203 = vsyncpa [#allocation9], 1 }

</bundles_post_ra>
